<compile_context>
chip_gen: v7x
topology: tpu7x:2x2x1
jax: 0.10.0
libtpu: 0.0.40
codegen_flags: <defaults>
</compile_context>

<pallas_src>
import jax
import jax.numpy as jnp
from jax import lax
from jax.experimental import pallas as pl
from jax.experimental.pallas import tpu as pltpu


# ----------------------------- Fused Pallas kernel --------------------------

def _fused_mlp_ln_kernel(x_ref, w1_ref, w2_ref, bias_ref, gb_ref, o_ref):
    # x_ref   : (TB*S, F)    TB batch elements, rows folded into the matmul M dim
    # w1_ref  : (F, H1)
    # w2_ref  : (H1, H2)
    # bias_ref: (1, H1+H2)   [b1 | b2] packed along the lane axis
    # gb_ref  : (S, 2)       column 0 = gamma, column 1 = beta (LayerNorm affine)
    # o_ref   : (TB, S, H2)
    TB, S, H2 = o_ref.shape
    H1 = w1_ref.shape[1]

    b1 = bias_ref[:, :H1]                                     # (1, H1)
    b2 = bias_ref[:, H1:]                                     # (1, H2)
    g = gb_ref[:, 0:1]                                        # (S, 1)
    bt = gb_ref[:, 1:2]                                       # (S, 1)

    # MLP on the folded (TB*S, .) rows: one MXU pass per matmul for all batches.
    h = jnp.dot(x_ref[...], w1_ref[...],
                preferred_element_type=jnp.float32) + b1
    h = jnp.maximum(h, 0.0)                                   # ReLU
    y = jnp.dot(h, w2_ref[...],
                preferred_element_type=jnp.float32) + b2      # (TB*S, H2)

    # LayerNorm(stock_num) applied after permute(0, 2, 1): for each
    # (batch, hidden) pair, normalize over the S stock rows (biased variance,
    # eps = 1e-6 per the module).  Each batch's S rows are a contiguous
    # sublane group of y; reduce each group over axis=0 (sublanes).
    for b in range(TB):                                       # tiny static unroll
        yb = y[b * S:(b + 1) * S, :]                          # (S, H2)
        mean = jnp.mean(yb, axis=0, keepdims=True)            # (1, H2)
        d = yb - mean
        var = jnp.mean(d * d, axis=0, keepdims=True)          # (1, H2)
        out = d * lax.rsqrt(var + 1e-6) * g + bt
        o_ref[b] = out.astype(o_ref.dtype)


# ------------------------------ Python wrapper ------------------------------

def stock_represent_forward(x, params, *, batch_tile=None):
    """x: (B, S, F) float32 with S == stock_num. Returns (B, S, H2)."""
    w1, b1, w2, b2, gamma, beta = (
        params["w1"], params["b1"], params["w2"], params["b2"],
        params["gamma"], params["beta"],
    )
    B, S, F = x.shape
    H1 = w1.shape[1]
    H2 = w2.shape[1]

    # All batch elements per grid step at this size (grid=(1,)): the entire
    # working set is a few KiB of VMEM, so extra steps are pure overhead.
    # At production scale pick batch_tile so per-step work > ~0.35 us and
    # there are >= 2 steps (second v7x TensorCore via "parallel").
    tb = B if batch_tile is None else batch_tile
    assert B % tb == 0, "batch_tile must divide the batch size"

    x2d = x.reshape(B * S, F)                          # fold batch into M dim
    bias_cat = jnp.concatenate([b1, b2]).reshape(1, H1 + H2)
    gb = jnp.stack([gamma, beta], axis=1)              # (S, 2)

    return pl.pallas_call(
        _fused_mlp_ln_kernel,
        out_shape=jax.ShapeDtypeStruct((B, S, H2), jnp.float32),
        grid_spec=pltpu.PrefetchScalarGridSpec(
            num_scalar_prefetch=0,
            grid=(B // tb,),
            in_specs=[
                # tb batches of folded stock rows per step
                pl.BlockSpec((tb * S, F), lambda i: (i, 0)),
                # weights / packed biases / packed LN params: resident blocks
                pl.BlockSpec((F, H1), lambda i: (0, 0)),
                pl.BlockSpec((H1, H2), lambda i: (0, 0)),
                pl.BlockSpec((1, H1 + H2), lambda i: (0, 0)),
                pl.BlockSpec((S, 2), lambda i: (0, 0)),
            ],
            out_specs=pl.BlockSpec((tb, S, H2), lambda i: (i, 0, 0)),
        ),
        compiler_params=pltpu.CompilerParams(
            dimension_semantics=("parallel",)),
    )(x2d, w1, w2, bias_cat, gb)


# ------------------------------ Reference (pure JAX) ------------------------

def stock_represent_ref(x, params):
    w1, b1, w2, b2, gamma, beta = (
        params["w1"], params["b1"], params["w2"], params["b2"],
        params["gamma"], params["beta"],
    )
    B, S, F = x.shape
    h = jnp.maximum(x.reshape(-1, F) @ w1 + b1, 0.0)
    y = h @ w2 + b2
    y = y.reshape(B, S, -1)
    y_t = jnp.transpose(y, (0, 2, 1))
    mean = jnp.mean(y_t, axis=-1, keepdims=True)
    var = jnp.mean((y_t - mean) ** 2, axis=-1, keepdims=True)
    out = (y_t - mean) / jnp.sqrt(var + 1e-6) * gamma + beta
    return jnp.transpose(out, (0, 2, 1))


# ---------------------------------- main ------------------------------------

if __name__ == "__main__":
    # Small shapes consistent with the module:
    #   obs_shape = (stock_num=8, feat=32), hidden_size_list = [64, 16, ...]
    B, STOCK, FEAT = 2, 8, 32
    H1, H2 = 64, 16

    key = jax.random.PRNGKey(0)
    kx, k1, k2, k3, k4 = jax.random.split(key, 5)

    x = jax.random.uniform(kx, (B, STOCK, FEAT), dtype=jnp.float32)

    # Deterministic parameter init (shapes per __init__; synthetic weights).
    params = {
        "w1": jax.random.normal(k1, (FEAT, H1), dtype=jnp.float32) * (1.0 / jnp.sqrt(FEAT)),
        "b1": jax.random.normal(k2, (H1,), dtype=jnp.float32) * 0.01,
        "w2": jax.random.normal(k3, (H1, H2), dtype=jnp.float32) * (1.0 / jnp.sqrt(H1)),
        "b2": jax.random.normal(k4, (H2,), dtype=jnp.float32) * 0.01,
        # torch.nn.LayerNorm default init: weight=1, bias=0
        "gamma": jnp.ones((STOCK,), dtype=jnp.float32),
        "beta": jnp.zeros((STOCK,), dtype=jnp.float32),
    }

    out = stock_represent_forward(x, params)
    out = jax.block_until_ready(out)

    ref = stock_represent_ref(x, params)
    assert out.shape == (B, STOCK, H2), out.shape
    assert jnp.allclose(out, ref, atol=1e-5, rtol=1e-5), "mismatch vs reference"

    print("KERNEL_OK")
</pallas_src>

<mosaic_0001>
module attributes {stable_mosaic.version = 11 : i64} {
  func.func @_fused_mlp_ln_kernel(%arg0: i32, %arg1: memref<16x32xf32, #tpu.memory_space<vmem>>, %arg2: memref<32x64xf32, #tpu.memory_space<vmem>>, %arg3: memref<64x16xf32, #tpu.memory_space<vmem>>, %arg4: memref<1x80xf32, #tpu.memory_space<vmem>>, %arg5: memref<8x2xf32, #tpu.memory_space<vmem>>, %arg6: memref<2x8x16xf32, #tpu.memory_space<vmem>>) attributes {dimension_semantics = [#tpu.dimension_semantics<parallel>], iteration_bounds = array<i64: 1>, scalar_prefetch = 0 : i64, scratch_operands = 0 : i64, tpu.core_type = #tpu.core_type<tc>, window_params = [{transform_indices = @transform_0, window_bounds = array<i64: 16, 32>}, {pipeline_mode = #tpu.pipeline_mode<synchronous>, transform_indices = @transform_1, window_bounds = array<i64: 32, 64>}, {pipeline_mode = #tpu.pipeline_mode<synchronous>, transform_indices = @transform_2, window_bounds = array<i64: 64, 16>}, {pipeline_mode = #tpu.pipeline_mode<synchronous>, transform_indices = @transform_3, window_bounds = array<i64: 1, 80>}, {pipeline_mode = #tpu.pipeline_mode<synchronous>, transform_indices = @transform_4, window_bounds = array<i64: 8, 2>}, {transform_indices = @transform_5, window_bounds = array<i64: 2, 8, 16>}]} {
    %c0 = arith.constant 0 : index
    %c0_0 = arith.constant 0 : index
    %0 = vector.load %arg4[%c0, %c0_0] : memref<1x80xf32, #tpu.memory_space<vmem>>, vector<1x64xf32>
    %c0_1 = arith.constant 0 : index
    %c64 = arith.constant 64 : index
    %1 = vector.load %arg4[%c0_1, %c64] : memref<1x80xf32, #tpu.memory_space<vmem>>, vector<1x16xf32>
    %c0_2 = arith.constant 0 : index
    %c0_3 = arith.constant 0 : index
    %2 = vector.load %arg5[%c0_2, %c0_3] : memref<8x2xf32, #tpu.memory_space<vmem>>, vector<8x1xf32>
    %c0_4 = arith.constant 0 : index
    %c1 = arith.constant 1 : index
    %3 = vector.load %arg5[%c0_4, %c1] : memref<8x2xf32, #tpu.memory_space<vmem>>, vector<8x1xf32>
    %c0_5 = arith.constant 0 : index
    %c0_6 = arith.constant 0 : index
    %4 = vector.load %arg1[%c0_5, %c0_6] : memref<16x32xf32, #tpu.memory_space<vmem>>, vector<16x32xf32>
    %c0_7 = arith.constant 0 : index
    %c0_8 = arith.constant 0 : index
    %5 = vector.load %arg2[%c0_7, %c0_8] : memref<32x64xf32, #tpu.memory_space<vmem>>, vector<32x64xf32>
    %cst = arith.constant dense<0.000000e+00> : vector<16x64xf32>
    %6 = tpu.matmul %4, %5, %cst {dimension_numbers = #tpu.dot_dimension_numbers<[1], [0], [0], [1], [0, 0, 1, 1], [], []>} : vector<16x32xf32>, vector<32x64xf32>, vector<16x64xf32> -> vector<16x64xf32>
    %7 = vector.broadcast %0 : vector<1x64xf32> to vector<16x64xf32>
    %8 = arith.addf %6, %7 : vector<16x64xf32>
    %cst_9 = arith.constant 0.000000e+00 : f32
    %9 = vector.broadcast %cst_9 : f32 to vector<16x64xf32>
    %10 = arith.maximumf %8, %9 : vector<16x64xf32>
    %c0_10 = arith.constant 0 : index
    %c0_11 = arith.constant 0 : index
    %11 = vector.load %arg3[%c0_10, %c0_11] : memref<64x16xf32, #tpu.memory_space<vmem>>, vector<64x16xf32>
    %cst_12 = arith.constant dense<0.000000e+00> : vector<16x16xf32>
    %12 = tpu.matmul %10, %11, %cst_12 {dimension_numbers = #tpu.dot_dimension_numbers<[1], [0], [0], [1], [0, 0, 1, 1], [], []>} : vector<16x64xf32>, vector<64x16xf32>, vector<16x16xf32> -> vector<16x16xf32>
    %13 = vector.broadcast %1 : vector<1x16xf32> to vector<16x16xf32>
    %14 = arith.addf %12, %13 : vector<16x16xf32>
    %15 = vector.extract_strided_slice %14 {offsets = [0, 0], sizes = [8, 16], strides = [1, 1]} : vector<16x16xf32> to vector<8x16xf32>
    %cst_13 = arith.constant dense<0.000000e+00> : vector<16xf32>
    %16 = vector.multi_reduction <add>, %15, %cst_13 [0] : vector<8x16xf32> to vector<16xf32>
    %17 = vector.shape_cast %16 : vector<16xf32> to vector<1x16xf32>
    %cst_14 = arith.constant 8.000000e+00 : f32
    %18 = vector.broadcast %cst_14 : f32 to vector<1x16xf32>
    %19 = arith.divf %17, %18 : vector<1x16xf32>
    %20 = vector.broadcast %19 : vector<1x16xf32> to vector<8x16xf32>
    %21 = arith.subf %15, %20 : vector<8x16xf32>
    %22 = arith.mulf %21, %21 : vector<8x16xf32>
    %cst_15 = arith.constant dense<0.000000e+00> : vector<16xf32>
    %23 = vector.multi_reduction <add>, %22, %cst_15 [0] : vector<8x16xf32> to vector<16xf32>
    %24 = vector.shape_cast %23 : vector<16xf32> to vector<1x16xf32>
    %cst_16 = arith.constant 8.000000e+00 : f32
    %25 = vector.broadcast %cst_16 : f32 to vector<1x16xf32>
    %26 = arith.divf %24, %25 : vector<1x16xf32>
    %cst_17 = arith.constant 9.99999997E-7 : f32
    %27 = vector.broadcast %cst_17 : f32 to vector<1x16xf32>
    %28 = arith.addf %26, %27 : vector<1x16xf32>
    %29 = math.rsqrt %28 : vector<1x16xf32>
    %30 = vector.broadcast %29 : vector<1x16xf32> to vector<8x16xf32>
    %31 = arith.mulf %21, %30 : vector<8x16xf32>
    %32 = vector.broadcast %2 : vector<8x1xf32> to vector<8x16xf32>
    %33 = arith.mulf %31, %32 : vector<8x16xf32>
    %34 = vector.broadcast %3 : vector<8x1xf32> to vector<8x16xf32>
    %35 = arith.addf %33, %34 : vector<8x16xf32>
    %c0_18 = arith.constant 0 : index
    %c0_19 = arith.constant 0 : index
    %c0_20 = arith.constant 0 : index
    %36 = vector.load %arg6[%c0_18, %c0_19, %c0_20] : memref<2x8x16xf32, #tpu.memory_space<vmem>>, vector<1x8x16xf32>
    %37 = vector.shape_cast %36 : vector<1x8x16xf32> to vector<8x16xf32>
    %38 = vector.shape_cast %35 : vector<8x16xf32> to vector<1x8x16xf32>
    tpu.vector_store %arg6[%c0_18, %c0_19, %c0_20], %38 {strides = array<i32>} : memref<2x8x16xf32, #tpu.memory_space<vmem>>, vector<1x8x16xf32>,
    %39 = vector.extract_strided_slice %14 {offsets = [8, 0], sizes = [8, 16], strides = [1, 1]} : vector<16x16xf32> to vector<8x16xf32>
    %cst_21 = arith.constant dense<0.000000e+00> : vector<16xf32>
    %40 = vector.multi_reduction <add>, %39, %cst_21 [0] : vector<8x16xf32> to vector<16xf32>
    %41 = vector.shape_cast %40 : vector<16xf32> to vector<1x16xf32>
    %cst_22 = arith.constant 8.000000e+00 : f32
    %42 = vector.broadcast %cst_22 : f32 to vector<1x16xf32>
    %43 = arith.divf %41, %42 : vector<1x16xf32>
    %44 = vector.broadcast %43 : vector<1x16xf32> to vector<8x16xf32>
    %45 = arith.subf %39, %44 : vector<8x16xf32>
    %46 = arith.mulf %45, %45 : vector<8x16xf32>
    %cst_23 = arith.constant dense<0.000000e+00> : vector<16xf32>
    %47 = vector.multi_reduction <add>, %46, %cst_23 [0] : vector<8x16xf32> to vector<16xf32>
    %48 = vector.shape_cast %47 : vector<16xf32> to vector<1x16xf32>
    %cst_24 = arith.constant 8.000000e+00 : f32
    %49 = vector.broadcast %cst_24 : f32 to vector<1x16xf32>
    %50 = arith.divf %48, %49 : vector<1x16xf32>
    %cst_25 = arith.constant 9.99999997E-7 : f32
    %51 = vector.broadcast %cst_25 : f32 to vector<1x16xf32>
    %52 = arith.addf %50, %51 : vector<1x16xf32>
    %53 = math.rsqrt %52 : vector<1x16xf32>
    %54 = vector.broadcast %53 : vector<1x16xf32> to vector<8x16xf32>
    %55 = arith.mulf %45, %54 : vector<8x16xf32>
    %56 = vector.broadcast %2 : vector<8x1xf32> to vector<8x16xf32>
    %57 = arith.mulf %55, %56 : vector<8x16xf32>
    %58 = vector.broadcast %3 : vector<8x1xf32> to vector<8x16xf32>
    %59 = arith.addf %57, %58 : vector<8x16xf32>
    %c1_26 = arith.constant 1 : index
    %c0_27 = arith.constant 0 : index
    %c0_28 = arith.constant 0 : index
    %60 = vector.load %arg6[%c1_26, %c0_27, %c0_28] : memref<2x8x16xf32, #tpu.memory_space<vmem>>, vector<1x8x16xf32>
    %61 = vector.shape_cast %60 : vector<1x8x16xf32> to vector<8x16xf32>
    %62 = vector.shape_cast %59 : vector<8x16xf32> to vector<1x8x16xf32>
    tpu.vector_store %arg6[%c1_26, %c0_27, %c0_28], %62 {strides = array<i32>} : memref<2x8x16xf32, #tpu.memory_space<vmem>>, vector<1x8x16xf32>,
    return
  }
  func.func @transform_0(%arg0: i32) -> (i32, i32) {
    %c0_i32 = arith.constant 0 : i32
    %c0_i32_0 = arith.constant 0 : i32
    return %arg0, %c0_i32 : i32, i32
  }
  func.func @transform_1(%arg0: i32) -> (i32, i32) {
    %c0_i32 = arith.constant 0 : i32
    %c0_i32_0 = arith.constant 0 : i32
    %c0_i32_1 = arith.constant 0 : i32
    return %c0_i32, %c0_i32_0 : i32, i32
  }
  func.func @transform_2(%arg0: i32) -> (i32, i32) {
    %c0_i32 = arith.constant 0 : i32
    %c0_i32_0 = arith.constant 0 : i32
    %c0_i32_1 = arith.constant 0 : i32
    return %c0_i32, %c0_i32_0 : i32, i32
  }
  func.func @transform_3(%arg0: i32) -> (i32, i32) {
    %c0_i32 = arith.constant 0 : i32
    %c0_i32_0 = arith.constant 0 : i32
    %c0_i32_1 = arith.constant 0 : i32
    return %c0_i32, %c0_i32_0 : i32, i32
  }
  func.func @transform_4(%arg0: i32) -> (i32, i32) {
    %c0_i32 = arith.constant 0 : i32
    %c0_i32_0 = arith.constant 0 : i32
    %c0_i32_1 = arith.constant 0 : i32
    return %c0_i32, %c0_i32_0 : i32, i32
  }
  func.func @transform_5(%arg0: i32) -> (i32, i32, i32) {
    %c0_i32 = arith.constant 0 : i32
    %c0_i32_0 = arith.constant 0 : i32
    %c0_i32_1 = arith.constant 0 : i32
    return %arg0, %c0_i32, %c0_i32_0 : i32, i32, i32
  }
}

</mosaic_0001>

<bundles_post_ra>
// kernel: tpu_custom_call.1
= control target key start
LH: loop header
LB: loop body
LE: loop exit
PB: predicated region body
PF: predicated region fallthrough
CT: control target
= control target key end

     0   :  { %vm35_vm0 = vcmask 261120   ;;  %s504_s0 = inlined_call_operand.vmem [shape: f32[16,32], index: 0, kind: input, shape index: {}]   ;;  %s505_s1 = inlined_call_operand.vmem [shape: f32[32,64], index: 1, kind: input, shape index: {}]   ;;  %s506_s2 = inlined_call_operand.vmem [shape: f32[64,16], index: 2, kind: input, shape index: {}]   ;;  %s507_s3 = inlined_call_operand.vmem [shape: f32[1,80], index: 3, kind: input, shape index: {}]   ;;  %s508_s4 = inlined_call_operand.vmem [shape: f32[8,2], index: 4, kind: input, shape index: {}]   ;;  %s509_s5 = inlined_call_operand.hbm [shape: f32[2,8,16], index: 5, kind: output, shape index: {}]  }
   0x1   :  { %v25_v0 = vld [vmem:[%s505_s1] sm:$0xff]  ;;  %v26_v1 = vld [vmem:[%s505_s1 + $0x8] sm:$0xff]  ;;  %v27_v2 = vld [vmem:[%s505_s1 + $0x10] sm:$0xff] }
   0x2   :  { %v339_v3 = vpack.c.bf16 %v26_v1, %v25_v0  ;;  %v28_v4 = vld [vmem:[%s505_s1 + $0x18] sm:$0xff]  ;;  %v23_v5 = vld [vmem:[%s504_s0] sm:$0xff]  ;;  %v120_v8 = vld [vmem:[%s506_s2 + $0x8] sm:$0xff] }
   0x3   :  { %v343_v6 = vpack.c.bf16 %v28_v4, %v27_v2  ;;  %317 = vmatprep.mubr.msk.f32.mxu0 %vm35_vm0, %v23_v5  ;;  %v119_v7 = vld [vmem:[%s506_s2] sm:$0xff]  ;;  %v121_v9 = vld [vmem:[%s506_s2 + $0x10] sm:$0xff]  ;;  %v122_v11 = vld [vmem:[%s506_s2 + $0x18] sm:$0xff] }
   0x4   :  { %340 = vmatprep.subr.bf16.mxu0 %v339_v3  ;;  %v347_v10 = vpack.c.bf16 %v120_v8, %v119_v7  ;;  %v351_v12 = vpack.c.bf16 %v122_v11, %v121_v9  ;;  %v123_v13 = vld [vmem:[%s506_s2 + $0x20] sm:$0xff]  ;;  %v124_v14 = vld [vmem:[%s506_s2 + $0x28] sm:$0xff] }
   0x5   :  { %342 = vmatpush3.bf16.msra.mxu0 %v339_v3 }
   0x6   :  { %10 = vsyncpa [#allocation3], 0  ;;  %344 = vmatprep.subr.bf16.mxu0 %v343_v6  ;;  %348 = vmatprep.subr.bf16.mxu1 %v347_v10  ;;  %v355_v15 = vpack.c.bf16 %v124_v14, %v123_v13  ;;  %v24_v16 = vld [vmem:[%s504_s0 + $0x8] sm:$0xff]  ;;  %v125_v17 = vld [vmem:[%s506_s2 + $0x30] sm:$0xff]  ;;  %s400_s0 = smov 64   ;;  %v401_v22 = vmov 1  }
   0x7   :  { %350 = vmatpush3.bf16.msra.mxu1 %v347_v10  ;;  %v126_v18 = vld [vmem:[%s506_s2 + $0x38] sm:$0xff]  ;;  %v288_v20 = vld [vmem:[%s507_s3] ss:$0 sm:$0xff]  ;;  %370 = vset.pattern.permute.xlu1 %v401_v22  ;;  %v402_v23 = vmov 0   ;;  %vm130_vm1 = vcmask 523264   ;;  %vm212_vm2 = vcmask 130048  }
   0x8   :  { %352 = vmatprep.subr.bf16.mxu1 %v351_v12  ;;  %v359_v19 = vpack.c.bf16 %v126_v18, %v125_v17  ;;  %127 = vrot.lane.b32.xlu0 %v288_v20, %s400_s0  ;;  %v22_v21 = vld [vmem:[%s508_s4] sm:$0xff]  ;;  %s403_s2 = smov [#allocation2]  }
   0x9   :  { %346 = vmatpush3.bf16.msra.mxu0 %v343_v6  ;;  %369 = vset.pattern.permute.xlu0 %v402_v23  ;;  %s277_s3 = sshll.u32 %s403_s2, 4  ;;  %s278_s3 = int_to_ptr.vmem [resolvable:$true] %s277_s3 }
   0xa   :  { %242 = vperm.xlu1 %370, %v22_v21   ;;  %s376_s4 = scalar_lea.vmem %s278_s3, 256  ;;  %p381_p1 = scmp.lt.s32.totalorder %s278_s3, %s278_s3 }
   0xb   :  { %354 = vmatpush3.bf16.msra.mxu1 %v351_v12  ;;  %p377_p0 = scmp.ne.s32.totalorder %s278_s3, %s376_s4  ;;  %p382_p2 = scmp.lt.s32.totalorder %s376_s4, %s376_s4 }
   0xc   :  { %318 = vmatmul.mubr.msk.f32.vlgmr.msra.gmra.mrb[0].mxu0 %vm35_vm0, %v24_v16  ;;  %356 = vmatprep.subr.bf16.mxu1 %v355_v15 }
   0xd   :  { %237 = vperm.xlu0 %369, %v22_v21   ;;  %p383_p3 = por %p382_p2, %p381_p1 }
   0xf   :  { %358 = vmatpush3.bf16.msra.mxu1 %v355_v15  ;;  %p384_p4 = pnand %p383_p3, %p377_p0 }
  0x10   :  { %360 = vmatprep.subr.bf16.mxu1 %v359_v19 }
  0x11   :  { %371 = vset.pattern.permute.xlu0 %v401_v22 }
  0x13   :  { %362 = vmatpush3.bf16.msra.mxu1 %v359_v19 }
  0x7a   :  { %v128_v30 = vpop.permute.xlu0 %127 }
  0x89   :  { %v243_v14 = vpop.permute.xlu1 %242 }
  0x8c   :  { %v238_v10 = vpop.permute.xlu0 %237 }
  0xdf   :  { %v319_v24 = vpop.f32.mrb[0].mxu0 }
  0xe0   :  { %v114_v25 = vadd.f32 %v319_v24, %v288_v20  ;;  %v108_v26 = vpop.f32.mrb[1].mxu0 }
  0xe1   :  { %v109_v27 = vadd.f32 %v288_v20, %v108_v26 }
  0xe2   :  { %v118_v29 = vmax.f32 %v114_v25, 0.0 }
  0xe3   :  { %v117_v28 = vmax.f32 %v109_v27, 0.0 }
  0xe5   :  { %336 = vmatprep.mubr.msk.f32.mxu1 %vm130_vm1, %v117_v28 }
  0xe6   :  { %337 = vmatmul.mubr.msk.f32.vlgmr.msra.gmra.mrb[0].mxu1 %vm130_vm1, %v118_v29 }
 0x1b9   :  { %v338_v31 = vpop.f32.mrb[0].mxu1 }
 0x1ba   :  { %v209_v32 = vadd.f32 %v338_v31, %v128_v30  ;;  %v203_v33 = vpop.f32.mrb[1].mxu1 }
 0x1bb   :  { %v204_v34 = vadd.f32 %v203_v33, %v128_v30 }
 0x1bc   :  { %v247_v35 = vsel %vm212_vm2, %v209_v32, 0.0 }
 0x1bd   :  { %v248_v36 = vrot.slane %v247_v35, 4  ;;  %v213_v37 = vsel %vm212_vm2, %v204_v34, 0.0 }
 0x1be   :  { %v214_v38 = vrot.slane %v213_v37, 4 }
 0x1bf   :  { %v249_v39 = vadd.f32 %v248_v36, %v247_v35 }
 0x1c0   :  { %v215_v40 = vadd.f32 %v214_v38, %v213_v37 }
 0x1c1   :  { %v250_v41 = vrot.slane %v249_v39, 2 }
 0x1c2   :  { %v216_v42 = vrot.slane %v215_v40, 2 }
 0x1c3   :  { %v251_v43 = vadd.f32 %v250_v41, %v249_v39 }
 0x1c4   :  { %v217_v44 = vadd.f32 %v216_v42, %v215_v40 }
 0x1c5   :  { %v252_v45 = vrot.slane %v251_v43, 1 }
 0x1c6   :  { %v218_v46 = vrot.slane %v217_v44, 1 }
 0x1c7   :  { %v253_v47 = vadd.f32 %v252_v45, %v251_v43 }
 0x1c8   :  { %v219_v48 = vadd.f32 %v218_v46, %v217_v44 }
 0x1c9   :  { %v254_v49 = vmul.f32 0.125, %v253_v47 }
 0x1ca   :  { %v221_v50 = vmul.f32 0.125, %v219_v48 }
 0x1cb   :  { %v255_v51 = vsub.f32 %v209_v32, %v254_v49 }
 0x1cc   :  { %v222_v52 = vsub.f32 %v204_v34, %v221_v50 }
 0x1cd   :  { %v256_v53 = vmul.f32 %v255_v51, %v255_v51 }
 0x1ce   :  { %v223_v54 = vmul.f32 %v222_v52, %v222_v52 }
 0x1cf   :  { %v257_v55 = vsel %vm212_vm2, %v256_v53, 0.0 }
 0x1d0   :  { %v258_v56 = vrot.slane %v257_v55, 4  ;;  %v224_v57 = vsel %vm212_vm2, %v223_v54, 0.0 }
 0x1d1   :  { %v225_v58 = vrot.slane %v224_v57, 4 }
 0x1d2   :  { %v259_v59 = vadd.f32 %v258_v56, %v257_v55 }
 0x1d3   :  { %v226_v60 = vadd.f32 %v225_v58, %v224_v57 }
 0x1d4   :  { %v260_v61 = vrot.slane %v259_v59, 2 }
 0x1d5   :  { %v227_v62 = vrot.slane %v226_v60, 2 }
 0x1d6   :  { %v261_v63 = vadd.f32 %v260_v61, %v259_v59 }
 0x1d7   :  { %v228_v0 = vadd.f32 %v227_v62, %v226_v60 }
 0x1d8   :  { %v262_v1 = vrot.slane %v261_v63, 1 }
 0x1d9   :  { %v229_v2 = vrot.slane %v228_v0, 1 }
 0x1da   :  { %v263_v3 = vadd.f32 %v262_v1, %v261_v63 }
 0x1db   :  { %v230_v4 = vadd.f32 %v229_v2, %v228_v0 }
 0x1dc   :  { %v264_v5 = vmul.f32 0.125, %v263_v3 }
 0x1dd   :  { %v231_v6 = vmul.f32 0.125, %v230_v4 }
 0x1de   :  { %v265_v7 = vadd.f32 1e-06, %v264_v5 }
 0x1df   :  { %v232_v8 = vadd.f32 1e-06, %v231_v6 }
 0x1e0   :  { %372 = vrsqrt.f32 %v265_v7 }
 0x1e1   :  { %374 = vrsqrt.f32 %v232_v8 }
 0x1ea   :  { %v373_v9 = vpop.eup %372 }
 0x1eb   :  { %v375_v11 = vpop.eup %374  ;;  %v267_v12 = vmul.f32 %v373_v9, %v255_v51 }
 0x1ec   :  { %v234_v13 = vmul.f32 %v375_v11, %v222_v52 }
 0x1ed   :  { %v268_v15 = vmul.f32 %v267_v12, %v238_v10 }
 0x1ee   :  { %v240_v16 = vmul.f32 %v238_v10, %v234_v13 }
 0x1ef   :  { %v269_v17 = vadd.f32 %v268_v15, %v243_v14 }
 0x1f0   :  { %v245_v18 = vadd.f32 %v243_v14, %v240_v16 }
 0x1f1   :  { %271 = vst.msk [vmem:[#allocation2 + $0x8] sm:$0xff] %vm212_vm2, %v269_v17 }
 0x1f2   :  { %246 = vst.msk [vmem:[#allocation2] sm:$0xff] %vm212_vm2, %v245_v18 }
 0x1f3   :  { %387 = shalt.err (!%p384_p4)
}
 0x1f4   :  { %s388_s26 = scalar_lea.hbm %s509_s5, 256 }
 0x1f5   :  { %p389_p5 = scmp.ne.s32.totalorder %s509_s5, %s388_s26  ;;  %p392_p6 = scmp.lt.u32.totalorder %s388_s26, %s509_s5 }
 0x1f7   :  { %p394_p7 = pnand %p392_p6, %p389_p5 }
 0x1f9   :  { %397 = shalt.err (!%p394_p7)
}
 0x1fa   :  { %s404_s6 = smov 128   ;;  %s405_s7 = smov 8  }
 0x1fb   :  { %283 = dma.vmem_to_hbm [thread:$0]  %s278_s3, 256, %s509_s5, [#allocation3], %s404_s6, %s404_s6, %s405_s7  }
 0x1fc   :  { %398 = dma.done.wait [#allocation3], 256  }
 0x1fd   :  { %399 = vsyncadd [#allocation3], 4294967040 }
 0x1fe   :  { %287 = vsyncpa [#allocation3], 1 }

</bundles_post_ra>
